<compile_context>
chip_gen: v7x
topology: tpu7x:2x2x1
jax: 0.10.0
libtpu: 0.0.40
codegen_flags: <defaults>
</compile_context>

<pallas_src>
import functools

import jax
import jax.numpy as jnp
from jax.experimental import pallas as pl
from jax.experimental.pallas import tpu as pltpu


def _round_up(x, m):
    return ((x + m - 1) // m) * m


def _chip_info():
    """Best-effort (generation, vmem_capacity_bytes). Defensive: never raises."""
    vmem = 64 * 1024 * 1024  # conservative default (v7x per-TC VMEM)
    name = ""
    try:
        info = pltpu.get_tpu_info()
        vmem = int(getattr(info, "vmem_capacity_bytes", vmem))
        for attr in ("chip_version", "version", "chip_name", "name"):
            v = getattr(info, attr, None)
            if v is not None:
                name = str(v).lower()
                break
    except Exception:
        pass
    if not name:
        try:
            name = str(jax.devices()[0].device_kind).lower()
        except Exception:
            name = ""
    if "7" in name:
        gen = "v7x"
    elif "6" in name:
        gen = "v6e"
    elif "5" in name:
        gen = "v5e"
    else:
        # Fall back to VMEM size: 64 MiB per TC ==> v7x-like.
        gen = "v7x" if vmem <= 64 * 1024 * 1024 else "v6e"
    return gen, vmem


# -----------------------------------------------------------------------------
# Kernel
# -----------------------------------------------------------------------------
def _internlm2_mlp_kernel(x_ref, wgu_ref, w2_ref, o_ref, acc_ref):
    # Grid: (token tiles i, I tiles j).  Axis 1 (j) is the reduction axis.
    #   x_ref:   (tm, H)       token tile
    #   wgu_ref: (H, 2 * ti)   fused [gate_tile_j | up_tile_j] columns
    #   w2_ref:  (ti, H)       down-projection tile j
    #   o_ref:   (tm, H)       output tile (resident across the I axis)
    #   acc_ref: (tm, H) f32   VMEM accumulator scratch
    j = pl.program_id(1)

    # One fused MXU matmul for gate AND up: (tm, H) @ (H, 2*ti) -> (tm, 2*ti).
    gu = jnp.dot(x_ref[...], wgu_ref[...], preferred_element_type=jnp.float32)
    ti = gu.shape[1] // 2
    gate = gu[:, :ti]
    up = gu[:, ti:]
    act = (gate * jax.nn.sigmoid(gate)) * up  # SiluAndMul

    # Partial down projection for this I tile.
    partial = jnp.dot(act.astype(w2_ref.dtype), w2_ref[...],
                      preferred_element_type=jnp.float32)

    # No explicit zero-init: write the first partial directly, accumulate after.
    @pl.when(j == 0)
    def _():
        acc_ref[...] = partial

    @pl.when(j > 0)
    def _():
        acc_ref[...] += partial

    @pl.when(j == pl.num_programs(1) - 1)
    def _():
        o_ref[...] = acc_ref[...].astype(o_ref.dtype)


# -----------------------------------------------------------------------------
# One-time (model-load) weight repacking — hoisted out of the per-call path.
# -----------------------------------------------------------------------------
def prepare_internlm2_mlp_weights(w_gate_up, w2, *, ti):
    """w_gate_up: [2*I, H] (PyTorch layout; rows 0..I-1 = gate, I..2I-1 = up).
    w2: [H, I] (PyTorch layout).

    Returns (wgu_packed [H, 2*I], w2_t [I, H]) where wgu_packed stores, for
    each I-tile j of width ti, the gate columns of tile j immediately followed
    by the up columns of tile j, so one BlockSpec block == one fused matmul.
    """
    two_I, H = w_gate_up.shape
    I = two_I // 2
    assert I % ti == 0, f"ti={ti} must divide intermediate size {I}"
    n = I // ti
    wg_t = w_gate_up[:I, :].T  # [H, I]
    wu_t = w_gate_up[I:, :].T  # [H, I]
    wgu_packed = jnp.stack(
        [wg_t.reshape(H, n, ti), wu_t.reshape(H, n, ti)], axis=2
    ).reshape(H, 2 * I)        # [H, 2*I], tile-interleaved: [g_j | u_j] per tile
    w2_t = w2.T                # [I, H]
    return wgu_packed, w2_t


# -----------------------------------------------------------------------------
# Tile-size selection: generation-aware, tm-first (arithmetic intensity).
# -----------------------------------------------------------------------------
def pick_tiles(T, H, I, weight_dtype, *, tm=None, ti=None):
    w_isz = jnp.dtype(weight_dtype).itemsize
    x_isz = w_isz  # activations assumed same width as weights (bf16 typical)
    gen, vmem_cap = _chip_info()
    min_rows = 16 if w_isz <= 2 else 8

    # --- tm: grow the token tile first; it sets FLOPs per weight byte. ---
    if tm is None:
        tm_target = {"v5e": 256, "v6e": 768, "v7x": 640}.get(gen, 512)
        Tp_est = _round_up(max(T, min_rows), min_rows)
        tm = min(tm_target, Tp_est)
        tm = max(min_rows, (tm // min_rows) * min_rows)
        # v7x megacore: make sure the "parallel" token axis has >= 2 tiles so
        # both TensorCores get work (decode / small-T regime).
        if gen == "v7x" and Tp_est >= 2 * min_rows and pl.cdiv(Tp_est, tm) < 2:
            tm = max(min_rows, ((Tp_est // 2) // min_rows) * min_rows)

    # --- ti: solved from the VMEM budget that remains after activations. ---
    if ti is None:
        align = 128 if gen == "v5e" else 256       # 256x256 MXU on v6e/v7x
        ti_cap = {"v5e": 1024, "v6e": 1024, "v7x": 512}.get(gen, 512)
        headroom = 10 << 20                        # compiler internal scratch
        budget = max(0, int(vmem_cap) - headroom)
        fixed = (2 * tm * H * x_isz                # x tiles, double-buffered
                 + 2 * tm * H * x_isz              # out tiles, double-buffered
                 + tm * H * 4)                     # f32 accumulator scratch
        per_ti = (2 * 3 * H * w_isz                # wgu (2*H) + w2 (H) cols, 2 bufs
                  + tm * (8 + w_isz))              # f32 gu + act intermediates
        ti = max(align, ((budget - fixed) // per_ti // align) * align)
        ti = min(ti, ti_cap, I)
        while ti > align and I % ti != 0:          # ti must divide I (packing)
            ti -= align
        if I % ti != 0:
            ti = I  # TODO(synk): pad I instead of falling back to a full tile.
    return tm, ti


# -----------------------------------------------------------------------------
# Wrapper
# -----------------------------------------------------------------------------
def internlm2_mlp(x, wgu_packed, w2_t, *, tm, ti, vmem_limit_bytes=None,
                  weight_buffers=2):
    """x: [T, H]; wgu_packed: [H, 2*I]; w2_t: [I, H] (pre-packed weights)."""
    T, H = x.shape
    I, H2 = w2_t.shape
    assert H2 == H and wgu_packed.shape == (H, 2 * I)
    assert I % ti == 0

    # Ragged token counts: pad to a multiple of tm, slice afterwards.
    Tp = pl.cdiv(T, tm) * tm
    x_p = x if Tp == T else jnp.pad(x, ((0, Tp - T), (0, 0)))

    x_isz = jnp.dtype(x.dtype).itemsize
    w_isz = jnp.dtype(wgu_packed.dtype).itemsize
    _, vmem_cap = _chip_info()
    if vmem_limit_bytes is None:
        est = (2 * tm * H * x_isz                        # x tiles, 2 bufs
               + 2 * tm * H * x_isz                      # out tiles, 2 bufs
               + weight_buffers * 3 * H * ti * w_isz     # wgu + w2 tiles
               + tm * H * 4                              # f32 accumulator
               + tm * ti * (8 + 2))                      # f32 gu + bf16 act
        vmem_limit_bytes = min(max(est + (12 << 20), 32 << 20), vmem_cap)

    # Optional deeper weight buffering (v6e only — 128 MiB VMEM headroom).
    wspec_kwargs = {}
    if weight_buffers and weight_buffers > 2:
        wspec_kwargs = dict(pipeline_mode=pl.Buffered(int(weight_buffers)))

    out = pl.pallas_call(
        _internlm2_mlp_kernel,
        out_shape=jax.ShapeDtypeStruct((Tp, H), x.dtype),
        grid_spec=pltpu.PrefetchScalarGridSpec(
            num_scalar_prefetch=0,
            grid=(Tp // tm, I // ti),                                # reduction last
            in_specs=[
                pl.BlockSpec((tm, H), lambda i, j: (i, 0)),          # x tile
                pl.BlockSpec((H, 2 * ti), lambda i, j: (0, j),       # fused gate/up
                             **wspec_kwargs),
                pl.BlockSpec((ti, H), lambda i, j: (j, 0),           # w2 tile
                             **wspec_kwargs),
            ],
            out_specs=pl.BlockSpec((tm, H), lambda i, j: (i, 0)),
            scratch_shapes=[pltpu.VMEM((tm, H), jnp.float32)],
        ),
        compiler_params=pltpu.CompilerParams(
            dimension_semantics=("parallel", "arbitrary"),
            vmem_limit_bytes=int(vmem_limit_bytes),
        ),
    )(x_p, wgu_packed, w2_t)

    return out if Tp == T else out[:T]


# -----------------------------------------------------------------------------
# Pure-JAX reference (mirrors the PyTorch module and the kernel's dtype path).
# -----------------------------------------------------------------------------
def internlm2_mlp_ref(x, w_gate_up, w2):
    I = w_gate_up.shape[0] // 2
    gate_up = jnp.dot(x.astype(jnp.float32), w_gate_up.T.astype(jnp.float32))
    gate, up = gate_up[:, :I], gate_up[:, I:]
    act = (gate * jax.nn.sigmoid(gate)) * up
    out = jnp.dot(act.astype(x.dtype).astype(jnp.float32),
                  w2.T.astype(jnp.float32))
    return out.astype(x.dtype)


if __name__ == "__main__":
    # Small, TPU-aligned shapes: hidden / intermediate are multiples of 128
    # (lane-dense output stores); T is deliberately NOT a multiple of tm so the
    # ragged-token path is exercised.
    T, H, I = 20, 256, 512
    dtype = jnp.bfloat16

    key = jax.random.PRNGKey(0)
    k_x, k_gu, k_w2 = jax.random.split(key, 3)
    x = jax.random.normal(k_x, (T, H), dtype=jnp.float32).astype(dtype)
    # PyTorch nn.Linear layout: [out_features, in_features].
    w_gate_up = (jax.random.normal(k_gu, (2 * I, H), jnp.float32) * 0.05).astype(dtype)
    w2 = (jax.random.normal(k_w2, (H, I), jnp.float32) * 0.05).astype(dtype)

    # Force a 2x2 grid at toy scale (tm=16 tokens, ti=256 of I) so both the
    # parallel token axis and the I-reduction axis are exercised; production
    # callers let pick_tiles choose generation-aware (tm-first) tiles.
    tm, ti = pick_tiles(T, H, I, dtype, tm=16, ti=256)

    # One-time weight repacking (model-load time, not in the per-call path).
    wgu_packed, w2_t = prepare_internlm2_mlp_weights(w_gate_up, w2, ti=ti)

    run = jax.jit(functools.partial(internlm2_mlp, tm=tm, ti=ti))
    out = jax.block_until_ready(run(x, wgu_packed, w2_t))

    ref = internlm2_mlp_ref(x, w_gate_up, w2)
    assert out.shape == (T, H)
    assert jnp.allclose(out.astype(jnp.float32), ref.astype(jnp.float32),
                        atol=2e-2, rtol=2e-2), "mismatch vs reference"

    print("KERNEL_OK")
</pallas_src>

<mosaic_0001>
module attributes {stable_mosaic.version = 11 : i64} {
  func.func @_internlm2_mlp_kernel(%arg0: i32, %arg1: i32, %arg2: memref<16x256xbf16, #tpu.memory_space<vmem>>, %arg3: memref<256x512xbf16, #tpu.memory_space<vmem>>, %arg4: memref<256x256xbf16, #tpu.memory_space<vmem>>, %arg5: memref<16x256xbf16, #tpu.memory_space<vmem>>, %arg6: memref<16x256xf32, #tpu.memory_space<vmem>>) attributes {dimension_semantics = [#tpu.dimension_semantics<parallel>, #tpu.dimension_semantics<arbitrary>], iteration_bounds = array<i64: 2, 2>, scalar_prefetch = 0 : i64, scratch_operands = 1 : i64, tpu.core_type = #tpu.core_type<tc>, window_params = [{transform_indices = @transform_0, window_bounds = array<i64: 16, 256>}, {transform_indices = @transform_1, window_bounds = array<i64: 256, 512>}, {transform_indices = @transform_2, window_bounds = array<i64: 256, 256>}, {transform_indices = @transform_3, window_bounds = array<i64: 16, 256>}]} {
    %c0 = arith.constant 0 : index
    %c0_0 = arith.constant 0 : index
    %0 = vector.load %arg2[%c0, %c0_0] : memref<16x256xbf16, #tpu.memory_space<vmem>>, vector<16x256xbf16>
    %c0_1 = arith.constant 0 : index
    %c0_2 = arith.constant 0 : index
    %1 = vector.load %arg3[%c0_1, %c0_2] : memref<256x512xbf16, #tpu.memory_space<vmem>>, vector<256x512xbf16>
    %cst = arith.constant dense<0.000000e+00> : vector<16x512xf32>
    %2 = tpu.matmul %0, %1, %cst {dimension_numbers = #tpu.dot_dimension_numbers<[1], [0], [0], [1], [0, 0, 1, 1], [], []>} : vector<16x256xbf16>, vector<256x512xbf16>, vector<16x512xf32> -> vector<16x512xf32>
    %3 = vector.extract_strided_slice %2 {offsets = [0, 0], sizes = [16, 256], strides = [1, 1]} : vector<16x512xf32> to vector<16x256xf32>
    %4 = vector.extract_strided_slice %2 {offsets = [0, 256], sizes = [16, 256], strides = [1, 1]} : vector<16x512xf32> to vector<16x256xf32>
    %5 = arith.negf %3 : vector<16x256xf32>
    %6 = math.exp %5 : vector<16x256xf32>
    %cst_3 = arith.constant 1.000000e+00 : f32
    %7 = vector.broadcast %cst_3 : f32 to vector<16x256xf32>
    %8 = arith.addf %7, %6 : vector<16x256xf32>
    %9 = arith.divf %7, %8 : vector<16x256xf32>
    %10 = arith.mulf %3, %9 : vector<16x256xf32>
    %11 = arith.mulf %10, %4 : vector<16x256xf32>
    %12 = arith.truncf %11 : vector<16x256xf32> to vector<16x256xbf16>
    %c0_4 = arith.constant 0 : index
    %c0_5 = arith.constant 0 : index
    %13 = vector.load %arg4[%c0_4, %c0_5] : memref<256x256xbf16, #tpu.memory_space<vmem>>, vector<256x256xbf16>
    %cst_6 = arith.constant dense<0.000000e+00> : vector<16x256xf32>
    %14 = tpu.matmul %12, %13, %cst_6 {dimension_numbers = #tpu.dot_dimension_numbers<[1], [0], [0], [1], [0, 0, 1, 1], [], []>} : vector<16x256xbf16>, vector<256x256xbf16>, vector<16x256xf32> -> vector<16x256xf32>
    %c0_i32 = arith.constant 0 : i32
    %15 = arith.cmpi eq, %arg1, %c0_i32 : i32
    %16 = arith.extui %15 : i1 to i32
    %c0_i32_7 = arith.constant 0 : i32
    %17 = arith.cmpi ne, %16, %c0_i32_7 : i32
    scf.if %17 {
      %c0_11 = arith.constant 0 : index
      %c0_12 = arith.constant 0 : index
      %24 = vector.load %arg6[%c0_11, %c0_12] : memref<16x256xf32, #tpu.memory_space<vmem>>, vector<16x256xf32>
      tpu.vector_store %arg6[%c0_11, %c0_12], %14 {strides = array<i32>} : memref<16x256xf32, #tpu.memory_space<vmem>>, vector<16x256xf32>,
    } else {
    }
    %c0_i32_8 = arith.constant 0 : i32
    %18 = arith.cmpi sgt, %arg1, %c0_i32_8 : i32
    %19 = arith.extui %18 : i1 to i32
    %c0_i32_9 = arith.constant 0 : i32
    %20 = arith.cmpi ne, %19, %c0_i32_9 : i32
    scf.if %20 {
      %c0_11 = arith.constant 0 : index
      %c0_12 = arith.constant 0 : index
      %24 = vector.load %arg6[%c0_11, %c0_12] : memref<16x256xf32, #tpu.memory_space<vmem>>, vector<16x256xf32>
      %25 = arith.addf %24, %14 : vector<16x256xf32>
      %c0_13 = arith.constant 0 : index
      %c0_14 = arith.constant 0 : index
      %26 = vector.load %arg6[%c0_13, %c0_14] : memref<16x256xf32, #tpu.memory_space<vmem>>, vector<16x256xf32>
      tpu.vector_store %arg6[%c0_13, %c0_14], %25 {strides = array<i32>} : memref<16x256xf32, #tpu.memory_space<vmem>>, vector<16x256xf32>,
    } else {
    }
    %c1_i32 = arith.constant 1 : i32
    %21 = arith.cmpi eq, %arg1, %c1_i32 : i32
    %22 = arith.extui %21 : i1 to i32
    %c0_i32_10 = arith.constant 0 : i32
    %23 = arith.cmpi ne, %22, %c0_i32_10 : i32
    scf.if %23 {
      %c0_11 = arith.constant 0 : index
      %c0_12 = arith.constant 0 : index
      %24 = vector.load %arg6[%c0_11, %c0_12] : memref<16x256xf32, #tpu.memory_space<vmem>>, vector<16x256xf32>
      %25 = arith.truncf %24 : vector<16x256xf32> to vector<16x256xbf16>
      %c0_13 = arith.constant 0 : index
      %c0_14 = arith.constant 0 : index
      %26 = vector.load %arg5[%c0_13, %c0_14] : memref<16x256xbf16, #tpu.memory_space<vmem>>, vector<16x256xbf16>
      tpu.vector_store %arg5[%c0_13, %c0_14], %25 {strides = array<i32>} : memref<16x256xbf16, #tpu.memory_space<vmem>>, vector<16x256xbf16>,
    } else {
    }
    return
  }
  func.func @transform_0(%arg0: i32, %arg1: i32) -> (i32, i32) {
    %c0_i32 = arith.constant 0 : i32
    %c0_i32_0 = arith.constant 0 : i32
    return %arg0, %c0_i32 : i32, i32
  }
  func.func @transform_1(%arg0: i32, %arg1: i32) -> (i32, i32) {
    %c0_i32 = arith.constant 0 : i32
    %c0_i32_0 = arith.constant 0 : i32
    return %c0_i32, %arg1 : i32, i32
  }
  func.func @transform_2(%arg0: i32, %arg1: i32) -> (i32, i32) {
    %c0_i32 = arith.constant 0 : i32
    %c0_i32_0 = arith.constant 0 : i32
    return %arg1, %c0_i32 : i32, i32
  }
  func.func @transform_3(%arg0: i32, %arg1: i32) -> (i32, i32) {
    %c0_i32 = arith.constant 0 : i32
    %c0_i32_0 = arith.constant 0 : i32
    return %arg0, %c0_i32 : i32, i32
  }
}

</mosaic_0001>

<bundles_post_ra>
// kernel: internlm2_mlp.1
= control target key start
LH: loop header
LB: loop body
LE: loop exit
PB: predicated region body
PF: predicated region fallthrough
CT: control target
= control target key end

     0   :  { %8 = vsyncpa [#allocation4], 0  ;;  %s2040_s0 = inlined_call_operand.vmem [shape: bf16[32,256], index: 0, kind: input, shape index: {}]   ;;  %s2041_s1 = inlined_call_operand.hbm [shape: bf16[256,1024], index: 1, kind: input, shape index: {}]   ;;  %s2042_s2 = inlined_call_operand.hbm [shape: bf16[512,256], index: 2, kind: input, shape index: {}]   ;;  %s2043_s3 = inlined_call_operand.vmem [shape: bf16[32,256], index: 3, kind: output, shape index: {}]  }
   0x1   :  { %10 = vsyncpa [#allocation4 + $0x1], 0 }
   0x2   :  { %11 = vsyncpa [#allocation6], 0 }
   0x3   :  { %13 = vsyncpa [#allocation6 + $0x1], 0  ;;  %s1726_s12 = smov 0   ;;  %s1728_s13 = smov 0  }
   0x4   :  { %s1730_s14 = smov 0   ;;  %s1732_s15 = smov 0  }
   0x5   :  { %s1734_s16 = smov 0   ;;  %s1736_s17 = smov 0  }
   0x6   :  { %s1738_s18 = smov 0   ;;  %s1740_s19 = smov 0  }
   0x7 LB: > { %s1187_s20 = sadd.s32 4294967295, %s1697_s19   ;;  %s28_s21 = sadd.s32 1, %s1689_s17  ;;  %s1697_s19 = sphi %s1740_s19, %s19_s19   ;;  %s1693_s18 = sphi %s1738_s18, %s2057_s18   ;;  %s1689_s17 = sphi %s1736_s17, %s2056_s17   ;;  %s1685_s16 = sphi %s1734_s16, %s2055_s16   ;;  %s1681_s15 = sphi %s1732_s15, %s2054_s15   ;;  %s1677_s14 = sphi %s1730_s14, %s2053_s14   ;;  %s1673_s13 = sphi %s1728_s13, %s2052_s13   ;;  %s1669_s12 = sphi %s1726_s12, %s2051_s12  }
   0x8   : > { %p29_p0 = scmp.ge.s32.totalorder %s28_s21, 2  ;;  %s31_s22 = sadd.s32 1, %s1693_s18 }
   0x9   : > { %s64_s23 = sadd.s32 1, %s1677_s14  ;;  %p71_p1 = scmp.ne.s32.totalorder %s1677_s14, %s1673_s13 }
   0xa   : > { %s2059_s21 = smov (%p29_p0, %s28_s21), 0  ;;  %s2061_s22 = smov (!%p29_p0, %s31_s22), %s1693_s18 }
   0xb   : > { %s61_s24 = ssub.s32 %s1689_s17, %s2059_s21  ;;  %p72_p2 = scmp.eq.s32.totalorder %s1697_s19, 0 }
   0xc   : > { %p33_p3 = scmp.ge.s32.totalorder %s2061_s22, 2  ;;  %p62_p4 = scmp.eq.s32.totalorder %s61_s24, 0 }
   0xd   : > { %p1776_p5 = por %p72_p2, %p71_p1  ;;  %p77_p6 = scmp.ne.s32.totalorder %s1673_s13, %s1669_s12 }
   0xe   : > { %s2063_s22 = smov (%p33_p3, %s2061_s22), 0  ;;  %p78_p7 = scmp.eq.s32.totalorder %s1187_s20, 0 }
   0xf   : > { %s1784_s26 = scalar_select %p62_p4, %s1677_s14, %s64_s23  }
  0x10   : > { %p1334_p8 = scmp.lt.s32.totalorder %s1697_s19, 4  ;;  %s1788_s27 = sand.u32 1, %s1677_s14  }
  0x11   : > { %p1790_p9 = por %p78_p7, %p77_p6  ;;  %s1191_s29 = sshll.u32 %s1788_s27, 9 }
  0x12   : > { %s1316_s30 = sshll.u32 %s1689_s17, 8  ;;  %s167_s7 = scalar_lea.vmem [#allocation3], %s1191_s29 }
  0x13   : > { %s2046_s28 = scalar_select %p1790_p9, 1, 0 }
  0x14   : > { %s1799_s6 = scalar_lea.hbm %s2041_s1, %s1316_s30  ;;  %s174_s8 = sshll.u32 %s167_s7, 4  ;;  %s1807_s8 = int_to_ptr.vmem [resolvable:$true] %s174_s8 }
  0x15   : > { %p1803_p10 = pnand %p1334_p8, %p1776_p5  ;;  %s164_s10 = scalar_lea.sflag [#allocation4], %s1788_s27 }
  0x16   : > { %s1567_s11 = scalar_lea.hbm %s1799_s6, 8192  ;;  %s1572_s23 = scalar_lea.hbm %s2041_s1, 16384 }
  0x17   : > { %p1568_p12 = scmp.ne.s32.totalorder %s1799_s6, %s1567_s11  ;;  %p1569_p13 = pneg %p1803_p10 }
  0x18   : > { %p1573_p2 = scmp.lt.u32.totalorder %s1799_s6, %s2041_s1  ;;  %p1574_p3 = scmp.lt.u32.totalorder %s1572_s23, %s1567_s11 }
  0x19   : > { %p1570_p0 = pnand %p1569_p13, %p1568_p12  ;;  %p1576_p5 = scmp.lt.u32.totalorder %s1567_s11, %s1799_s6 }
  0x1a   : > { %p1575_p4 = por %p1574_p3, %p1573_p2 }
  0x1b   : > { %p1571_p1 = pneg %p1570_p0 }
  0x1c   : > { %p1577_p6 = por %p1576_p5, %p1575_p4 }
  0x1e   : > { %p1578_p7 = pnand %p1577_p6, %p1571_p1 }
  0x20   : > { %1581 = shalt.err (!%p1578_p7)
}
  0x21   : > { %s1582_s29 = scalar_lea.vmem %s1807_s8, 8192  ;;  %s1699_s30 = smov [#allocation3]  }
  0x22   : > { %p1583_p8 = scmp.ne.s32.totalorder %s1807_s8, %s1582_s29  ;;  %s1587_s4 = sshll.u32 %s1699_s30, 4  ;;  %s1588_s4 = int_to_ptr.vmem [resolvable:$false] %s1587_s4 }
  0x23   : > { %s1589_s5 = scalar_lea.vmem %s1588_s4, 16384  ;;  %p1590_p11 = scmp.lt.s32.totalorder %s1807_s8, %s1588_s4 }
  0x24   : > { %p1585_p12 = pnand %p1583_p8, %p1569_p13  ;;  %p1591_p2 = scmp.lt.s32.totalorder %s1589_s5, %s1582_s29 }
  0x26   : > { %p1586_p0 = pneg %p1585_p12  ;;  %p1592_p3 = por %p1591_p2, %p1590_p11 }
  0x28   : > { %p1593_p4 = pnand %p1592_p3, %p1586_p0 }
  0x2a   : > { %1596 = shalt.err (!%p1593_p4)
}
  0x2b   : > { %s1700_s7 = smov 512   ;;  %s1701_s11 = smov 256  }
  0x2c   : > { %s1702_s12 = smov 16   ;;  %p204_p1 = scmp.lt.s32.totalorder %s1697_s19, 5 }
  0x2d   : > { %1330 = dma.hbm_to_vmem [thread:$0]  (!%p1803_p10), %s1799_s6, 8192, %s1807_s8, %s164_s10, %s1700_s7, %s1701_s11, %s1702_s12  }
  0x2e   : > { %s1194_s20 = sshll.u32 %s1788_s27, 8  ;;  %s1318_s23 = sshll.u32 %s1689_s17, 12 }
  0x2f   : > { %p2048_p11 = scmp.ge.s32.totalorder %s1697_s19, 1  ;;  %s1850_s30 = scalar_lea.hbm %s2042_s2, %s1318_s23 }
  0x30   : > { %s188_s4 = scalar_lea.vmem [#allocation5], %s1194_s20  ;;  %s185_s6 = scalar_lea.sflag [#allocation6], %s1788_s27 }
  0x31   : > { %p1843_p5 = pnand %p2048_p11, %p204_p1  ;;  %s196_s5 = sshll.u32 %s188_s4, 4  ;;  %s1852_s5 = int_to_ptr.vmem [resolvable:$true] %s196_s5 }
  0x32   : > { %s1597_s8 = scalar_lea.hbm %s1850_s30, 4096  ;;  %s1602_s11 = scalar_lea.hbm %s2042_s2, 8192 }
  0x33   : > { %p1598_p6 = scmp.ne.s32.totalorder %s1850_s30, %s1597_s8  ;;  %p1603_p12 = scmp.lt.u32.totalorder %s1850_s30, %s2042_s2 }
  0x34   : > { %p1604_p0 = scmp.lt.u32.totalorder %s1602_s11, %s1597_s8  ;;  %p1606_p3 = scmp.lt.u32.totalorder %s1597_s8, %s1850_s30 }
  0x35   : > { %p1600_p7 = pnand %p1598_p6, %p1569_p13 }
  0x36   : > { %p1605_p2 = por %p1604_p0, %p1603_p12 }
  0x37   : > { %p1601_p8 = pneg %p1600_p7 }
  0x38   : > { %p1607_p4 = por %p1606_p3, %p1605_p2 }
  0x3a   : > { %p1608_p1 = pnand %p1607_p4, %p1601_p8 }
  0x3c   : > { %1611 = shalt.err (!%p1608_p1)
}
  0x3d   : > { %s1612_s20 = scalar_lea.vmem %s1852_s5, 4096  ;;  %s1703_s25 = smov [#allocation5]  }
  0x3e   : > { %p1613_p11 = scmp.ne.s32.totalorder %s1852_s5, %s1612_s20  ;;  %s1617_s29 = sshll.u32 %s1703_s25, 4  ;;  %s1618_s29 = int_to_ptr.vmem [resolvable:$false] %s1617_s29 }
  0x3f   : > { %s1619_s4 = scalar_lea.vmem %s1618_s29, 8192  ;;  %p1620_p9 = scmp.lt.s32.totalorder %s1852_s5, %s1618_s29 }
  0x40   : > { %p1615_p6 = pnand %p1613_p11, %p1569_p13  ;;  %p1621_p12 = scmp.lt.s32.totalorder %s1619_s4, %s1612_s20 }
  0x42   : > { %p1616_p7 = pneg %p1615_p6  ;;  %p1622_p0 = por %p1621_p12, %p1620_p9 }
  0x44   : > { %p1623_p2 = pnand %p1622_p0, %p1616_p7 }
  0x46   : > { %1626 = shalt.err (!%p1623_p2)
}
  0x47   : > { %s1704_s8 = smov 128   ;;  %s1705_s10 = smov 8  }
  0x48   : > { %1333 = dma.hbm_to_vmem [thread:$0]  (!%p1803_p10), %s1850_s30, 4096, %s1852_s5, %s185_s6, %s1704_s8, %s1704_s8, %s1705_s10  }
  0x49   : > { %208 = sbr.rel (%p1843_p5) target bundleno = 633 (0x279), region = 32  ;;  %s210_s7 = sand.u32 (!%p1843_p5), 1, %s1673_s13  }
  0x4a   : > { %s1199_s11 = sshll.u32 (!%p1843_p5), %s210_s7, 9  ;;  %s211_s12 = scalar_lea.sflag (!%p1843_p5), [#allocation4], %s210_s7 }
  0x4b   : > { %s1883_s23 = scalar_lea.vmem (!%p1843_p5), [#allocation3], %s1199_s11  ;;  %p2050_p9 = scmp.ne.s32.totalorder (!%p1843_p5), %s2046_s28, 0 }
  0x50   : > { %1660 = dma.done.wait (%p2050_p9), %s211_s12, 8192  }
  0x51   : > { %1662 = vsyncadd (%p2050_p9), %s211_s12, 4294959104  ;;  %s1200_s20 = sshll.u32 %s210_s7, 8  ;;  %s220_s9 = scalar_lea.sflag [#allocation6], %s210_s7 }
  0x52   : > { %s1889_s27 = scalar_lea.vmem [#allocation5], %s1200_s20 }
  0x53   : > { %1664 = dma.done.wait (%p2050_p9), %s220_s9, 4096  }
  0x54   : > { %1666 = vsyncadd (%p2050_p9), %s220_s9, 4294963200  ;;  %s1201_s24 = sshll.u32 %s1685_s16, 1  ;;  %v1404_v0 = vld [vmem:[%s1883_s23 + $0x4] ss:$16 sps:$4 sm:$0xff]   ;;  %v1406_v1 = vld [vmem:[%s1883_s23] ss:$16 sps:$4 sm:$0xff]  }
  0x55   : > { %p259_p10 = scmp.lt.s32.totalorder %s1201_s24, 3  ;;  %670 = vmatprep.subr.bf16.mxu0 %v1404_v0  ;;  %v1407_v2 = vld [vmem:[%s1883_s23 + $0x24] ss:$16 sps:$4 sm:$0xff]   ;;  %v1409_v3 = vld [vmem:[%s1883_s23 + $0x20] ss:$16 sps:$4 sm:$0xff]   ;;  %p1309_p13 = scmp.ne.s32.totalorder %s1681_s15, 0 }
  0x56   : > { %671 = vmatpush1.bf16.msra.mxu0 %v1406_v1  ;;  %v1410_v4 = vld [vmem:[%s1883_s23 + $0x44] ss:$16 sps:$4 sm:$0xff]   ;;  %v1412_v5 = vld [vmem:[%s1883_s23 + $0x40] ss:$16 sps:$4 sm:$0xff]   ;;  %v1425_v7 = vld [vmem:[%s1883_s23 + $0xc] ss:$16 sps:$4 sm:$0xff]  }
  0x57   : > { %s2065_s24 = smov (!%p259_p10, %s1201_s24), 3  ;;  %672 = vmatprep.subr.bf16.mxu0 %v1407_v2  ;;  %v1413_v6 = vld [vmem:[%s1883_s23 + $0x64] ss:$16 sps:$4 sm:$0xff]   ;;  %v1427_v8 = vld [vmem:[%s1883_s23 + $0x8] ss:$16 sps:$4 sm:$0xff]   ;;  %713 = vmatprep.subr.bf16.mxu1 %v1425_v7 }
  0x58   : > { %s1319_s30 = sshll.u32 %s2065_s24, 3  ;;  %v1415_v9 = vld [vmem:[%s1883_s23 + $0x60] ss:$16 sps:$4 sm:$0xff]   ;;  %v1416_v10 = vld [vmem:[%s1883_s23 + $0x84] ss:$16 sps:$4 sm:$0xff]   ;;  %714 = vmatpush1.bf16.msra.mxu1 %v1427_v8 }
  0x59   : > { %s1904_s6 = scalar_lea.vmem %s2043_s3, %s1319_s30  ;;  %v1431_v11 = vld [vmem:[%s1883_s23 + $0x2c] ss:$16 sps:$4 sm:$0xff]   ;;  %v1433_v12 = vld [vmem:[%s1883_s23 + $0x28] ss:$16 sps:$4 sm:$0xff]   ;;  %v1418_v13 = vld [vmem:[%s1883_s23 + $0x80] ss:$16 sps:$4 sm:$0xff]   ;;  %s1943_s29 = scalar_lea.vmem %s2040_s0, %s1319_s30 }
  0x5a   : > { %673 = vmatpush1.bf16.msra.mxu0 %v1409_v3  ;;  %715 = vmatprep.subr.bf16.mxu1 %v1431_v11  ;;  %v1437_v14 = vld [vmem:[%s1883_s23 + $0x4c] ss:$16 sps:$4 sm:$0xff]   ;;  %v1419_v15 = vld [vmem:[%s1883_s23 + $0xa4] ss:$16 sps:$4 sm:$0xff]   ;;  %v1439_v16 = vld [vmem:[%s1883_s23 + $0x48] ss:$16 sps:$4 sm:$0xff]  }
  0x5b   : > { %674 = vmatprep.subr.bf16.mxu0 %v1410_v4  ;;  %v1443_v17 = vld [vmem:[%s1883_s23 + $0x6c] ss:$16 sps:$4 sm:$0xff]   ;;  %v1421_v18 = vld [vmem:[%s1883_s23 + $0xa0] ss:$16 sps:$4 sm:$0xff]   ;;  %v1422_v19 = vld [vmem:[%s1883_s23 + $0xc4] ss:$16 sps:$4 sm:$0xff]  }
  0x5c   : > { %716 = vmatpush1.bf16.msra.mxu1 %v1433_v12  ;;  %v1445_v20 = vld [vmem:[%s1883_s23 + $0x68] ss:$16 sps:$4 sm:$0xff]   ;;  %v1449_v21 = vld [vmem:[%s1883_s23 + $0x8c] ss:$16 sps:$4 sm:$0xff]   ;;  %v1424_v22 = vld [vmem:[%s1883_s23 + $0xc0] ss:$16 sps:$4 sm:$0xff]  }
  0x5d   : > { %717 = vmatprep.subr.bf16.mxu1 %v1437_v14  ;;  %v1428_v23 = vld [vmem:[%s1883_s23 + $0xe4] ss:$16 sps:$4 sm:$0xff]   ;;  %v1451_v24 = vld [vmem:[%s1883_s23 + $0x88] ss:$16 sps:$4 sm:$0xff]   ;;  %v1455_v25 = vld [vmem:[%s1883_s23 + $0xac] ss:$16 sps:$4 sm:$0xff]  }
  0x5e   : > { %675 = vmatpush1.bf16.msra.mxu0 %v1412_v5  ;;  %v1430_v26 = vld [vmem:[%s1883_s23 + $0xe0] ss:$16 sps:$4 sm:$0xff]   ;;  %v1434_v27 = vld [vmem:[%s1883_s23 + $0x104] ss:$16 sps:$4 sm:$0xff]   ;;  %v1457_v28 = vld [vmem:[%s1883_s23 + $0xa8] ss:$16 sps:$4 sm:$0xff]  }
  0x5f   : > { %676 = vmatprep.subr.bf16.mxu0 %v1413_v6  ;;  %v1461_v29 = vld [vmem:[%s1883_s23 + $0xcc] ss:$16 sps:$4 sm:$0xff]   ;;  %v1436_v30 = vld [vmem:[%s1883_s23 + $0x100] ss:$16 sps:$4 sm:$0xff]   ;;  %v1440_v31 = vld [vmem:[%s1883_s23 + $0x124] ss:$16 sps:$4 sm:$0xff]  }
  0x60   : > { %718 = vmatpush1.bf16.msra.mxu1 %v1439_v16  ;;  %v1463_v32 = vld [vmem:[%s1883_s23 + $0xc8] ss:$16 sps:$4 sm:$0xff]   ;;  %v1467_v33 = vld [vmem:[%s1883_s23 + $0xec] ss:$16 sps:$4 sm:$0xff]   ;;  %v1442_v34 = vld [vmem:[%s1883_s23 + $0x120] ss:$16 sps:$4 sm:$0xff]  }
  0x61   : > { %719 = vmatprep.subr.bf16.mxu1 %v1443_v17  ;;  %v1484_v35 = vld [vmem:[%s1943_s29 + $0x4] ss:$8 sps:$4 sm:$0xff]   ;;  %v1469_v37 = vld [vmem:[%s1883_s23 + $0xe8] ss:$16 sps:$4 sm:$0xff]   ;;  %v1448_v39 = vld [vmem:[%s1883_s23 + $0x140] ss:$16 sps:$4 sm:$0xff]  }
  0x62   : > { %677 = vmatpush1.bf16.msra.mxu0 %v1415_v9  ;;  %v1446_v36 = vld [vmem:[%s1883_s23 + $0x144] ss:$16 sps:$4 sm:$0xff]   ;;  %702 = vmatprep.mubr.bf16.mxu0 %v1484_v35  ;;  %v1473_v38 = vld [vmem:[%s1883_s23 + $0x10c] ss:$16 sps:$4 sm:$0xff]   ;;  %v1475_v41 = vld [vmem:[%s1883_s23 + $0x108] ss:$16 sps:$4 sm:$0xff]  }
  0x63   : > { %678 = vmatprep.subr.bf16.mxu0 %v1416_v10  ;;  %745 = vmatprep.mubr.bf16.mxu1 %v1484_v35  ;;  %v1452_v40 = vld [vmem:[%s1883_s23 + $0x164] ss:$16 sps:$4 sm:$0xff]   ;;  %v1479_v42 = vld [vmem:[%s1883_s23 + $0x12c] ss:$16 sps:$4 sm:$0xff]   ;;  %v1454_v43 = vld [vmem:[%s1883_s23 + $0x160] ss:$16 sps:$4 sm:$0xff]  }
  0x64   : > { %720 = vmatpush1.bf16.msra.mxu1 %v1445_v20  ;;  %v1458_v44 = vld [vmem:[%s1883_s23 + $0x184] ss:$16 sps:$4 sm:$0xff]   ;;  %v1481_v45 = vld [vmem:[%s1883_s23 + $0x128] ss:$16 sps:$4 sm:$0xff]   ;;  %v1485_v46 = vld [vmem:[%s1883_s23 + $0x14c] ss:$16 sps:$4 sm:$0xff]  }
  0x65   : > { %721 = vmatprep.subr.bf16.mxu1 %v1449_v21  ;;  %v1460_v47 = vld [vmem:[%s1883_s23 + $0x180] ss:$16 sps:$4 sm:$0xff]   ;;  %v1464_v48 = vld [vmem:[%s1883_s23 + $0x1a4] ss:$16 sps:$4 sm:$0xff]   ;;  %v1487_v49 = vld [vmem:[%s1883_s23 + $0x148] ss:$16 sps:$4 sm:$0xff]  }
  0x66   : > { %679 = vmatpush1.bf16.msra.mxu0 %v1418_v13  ;;  %v1488_v50 = vld [vmem:[%s1883_s23 + $0x16c] ss:$16 sps:$4 sm:$0xff]   ;;  %v1466_v51 = vld [vmem:[%s1883_s23 + $0x1a0] ss:$16 sps:$4 sm:$0xff]   ;;  %v1470_v52 = vld [vmem:[%s1883_s23 + $0x1c4] ss:$16 sps:$4 sm:$0xff]  }
  0x67   : > { %680 = vmatprep.subr.bf16.mxu0 %v1419_v15  ;;  %v1490_v53 = vld [vmem:[%s1883_s23 + $0x168] ss:$16 sps:$4 sm:$0xff]   ;;  %v1472_v54 = vld [vmem:[%s1883_s23 + $0x1c0] ss:$16 sps:$4 sm:$0xff]   ;;  %v1491_v55 = vld [vmem:[%s1883_s23 + $0x18c] ss:$16 sps:$4 sm:$0xff]  }
  0x68   : > { %722 = vmatpush1.bf16.msra.mxu1 %v1451_v24  ;;  %v1476_v56 = vld [vmem:[%s1883_s23 + $0x1e4] ss:$16 sps:$4 sm:$0xff]   ;;  %v1493_v57 = vld [vmem:[%s1883_s23 + $0x188] ss:$16 sps:$4 sm:$0xff]   ;;  %v1494_v58 = vld [vmem:[%s1883_s23 + $0x1ac] ss:$16 sps:$4 sm:$0xff]  }
  0x69   : > { %723 = vmatprep.subr.bf16.mxu1 %v1455_v25  ;;  %v1478_v59 = vld [vmem:[%s1883_s23 + $0x1e0] ss:$16 sps:$4 sm:$0xff]   ;;  %v1505_v60 = vld [vmem:[%s1889_s27 + $0x4] ss:$8 sps:$4 sm:$0xff]   ;;  %v1496_v61 = vld [vmem:[%s1883_s23 + $0x1a8] ss:$16 sps:$4 sm:$0xff]  }
  0x6a   : > { %681 = vmatpush1.bf16.msra.mxu0 %v1421_v18  ;;  %v1482_v62 = vld [vmem:[%s1943_s29] ss:$8 sps:$4 sm:$0xff]   ;;  %v1497_v63 = vld [vmem:[%s1883_s23 + $0x1cc] ss:$16 sps:$4 sm:$0xff]   ;;  %v1506_v4 = vld [vmem:[%s1889_s27 + $0x10] ss:$8 sps:$4 sm:$0xff]  }
  0x6b   : > { %682 = vmatprep.subr.bf16.mxu0 %v1422_v19  ;;  %v1503_v0 = vld [vmem:[%s1889_s27] ss:$8 sps:$4 sm:$0xff]   ;;  %v1508_v1 = vld [vmem:[%s1889_s27 + $0x14] ss:$8 sps:$4 sm:$0xff]   ;;  %v1511_v5 = vld [vmem:[%s1889_s27 + $0x24] ss:$8 sps:$4 sm:$0xff]  }
  0x6c   : > { %724 = vmatpush1.bf16.msra.mxu1 %v1457_v28  ;;  %v1499_v2 = vld [vmem:[%s1883_s23 + $0x1c8] ss:$16 sps:$4 sm:$0xff]   ;;  %v1500_v3 = vld [vmem:[%s1883_s23 + $0x1ec] ss:$16 sps:$4 sm:$0xff]  }
  0x6d   : > { %725 = vmatprep.subr.bf16.mxu1 %v1461_v29  ;;  %v1502_v6 = vld [vmem:[%s1883_s23 + $0x1e8] ss:$16 sps:$4 sm:$0xff]   ;;  %v1514_v8 = vld [vmem:[%s1889_s27 + $0x34] ss:$8 sps:$4 sm:$0xff]   ;;  %v1517_v10 = vld [vmem:[%s1889_s27 + $0x44] ss:$8 sps:$4 sm:$0xff]  }
  0x6e   : > { %683 = vmatpush1.bf16.msra.mxu0 %v1424_v22  ;;  %v1509_v7 = vld [vmem:[%s1889_s27 + $0x20] ss:$8 sps:$4 sm:$0xff]   ;;  %v1512_v9 = vld [vmem:[%s1889_s27 + $0x30] ss:$8 sps:$4 sm:$0xff]   ;;  %v1520_v12 = vld [vmem:[%s1889_s27 + $0x54] ss:$8 sps:$4 sm:$0xff]  }
  0x6f   : > { %684 = vmatprep.subr.bf16.mxu0 %v1428_v23  ;;  %v1515_v11 = vld [vmem:[%s1889_s27 + $0x40] ss:$8 sps:$4 sm:$0xff]   ;;  %v1518_v13 = vld [vmem:[%s1889_s27 + $0x50] ss:$8 sps:$4 sm:$0xff]   ;;  %v1523_v14 = vld [vmem:[%s1889_s27 + $0x64] ss:$8 sps:$4 sm:$0xff]  }
  0x70   : > { %726 = vmatpush1.bf16.msra.mxu1 %v1463_v32  ;;  %v1521_v15 = vld [vmem:[%s1889_s27 + $0x60] ss:$8 sps:$4 sm:$0xff]   ;;  %v1526_v16 = vld [vmem:[%s1889_s27 + $0x74] ss:$8 sps:$4 sm:$0xff]   ;;  %v1524_v17 = vld [vmem:[%s1889_s27 + $0x70] ss:$8 sps:$4 sm:$0xff]  }
  0x71   : > { %727 = vmatprep.subr.bf16.mxu1 %v1467_v33  ;;  %v1529_v18 = vld [vmem:[%s1889_s27 + $0x84] ss:$8 sps:$4 sm:$0xff]   ;;  %v1527_v19 = vld [vmem:[%s1889_s27 + $0x80] ss:$8 sps:$4 sm:$0xff]   ;;  %v1532_v20 = vld [vmem:[%s1889_s27 + $0x94] ss:$8 sps:$4 sm:$0xff]  }
  0x72   : > { %685 = vmatpush1.bf16.msra.mxu0 %v1430_v26  ;;  %v1530_v21 = vld [vmem:[%s1889_s27 + $0x90] ss:$8 sps:$4 sm:$0xff]   ;;  %v1535_v22 = vld [vmem:[%s1889_s27 + $0xa4] ss:$8 sps:$4 sm:$0xff]   ;;  %v1533_v23 = vld [vmem:[%s1889_s27 + $0xa0] ss:$8 sps:$4 sm:$0xff]  }
  0x73   : > { %686 = vmatprep.subr.bf16.mxu0 %v1434_v27  ;;  %v1538_v24 = vld [vmem:[%s1889_s27 + $0xb4] ss:$8 sps:$4 sm:$0xff]   ;;  %v1536_v25 = vld [vmem:[%s1889_s27 + $0xb0] ss:$8 sps:$4 sm:$0xff]   ;;  %v1541_v26 = vld [vmem:[%s1889_s27 + $0xc4] ss:$8 sps:$4 sm:$0xff]  }
  0x74   : > { %728 = vmatpush1.bf16.msra.mxu1 %v1469_v37  ;;  %v1539_v27 = vld [vmem:[%s1889_s27 + $0xc0] ss:$8 sps:$4 sm:$0xff]   ;;  %v1544_v28 = vld [vmem:[%s1889_s27 + $0xd4] ss:$8 sps:$4 sm:$0xff]   ;;  %v1542_v29 = vld [vmem:[%s1889_s27 + $0xd0] ss:$8 sps:$4 sm:$0xff]  }
  0x75   : > { %729 = vmatprep.subr.bf16.mxu1 %v1473_v38  ;;  %v1550_v32 = vld [vmem:[%s1889_s27 + $0xf4] ss:$8 sps:$4 sm:$0xff]   ;;  %v1548_v33 = vld [vmem:[%s1889_s27 + $0xf0] ss:$8 sps:$4 sm:$0xff]  }
  0x76   : > { %687 = vmatpush1.bf16.msra.mxu0 %v1436_v30  ;;  %v1547_v30 = vld [vmem:[%s1889_s27 + $0xe4] ss:$8 sps:$4 sm:$0xff]  }
  0x77   : > { %688 = vmatprep.subr.bf16.mxu0 %v1440_v31  ;;  %v1545_v31 = vld [vmem:[%s1889_s27 + $0xe0] ss:$8 sps:$4 sm:$0xff]  }
  0x78   : > { %730 = vmatpush1.bf16.msra.mxu1 %v1475_v41 }
  0x79   : > { %731 = vmatprep.subr.bf16.mxu1 %v1479_v42 }
  0x7a   : > { %689 = vmatpush1.bf16.msra.mxu0 %v1442_v34 }
  0x7b   : > { %690 = vmatprep.subr.bf16.mxu0 %v1446_v36 }
  0x7c   : > { %732 = vmatpush1.bf16.msra.mxu1 %v1481_v45 }
  0x7d   : > { %733 = vmatprep.subr.bf16.mxu1 %v1485_v46 }
  0x7e   : > { %691 = vmatpush1.bf16.msra.mxu0 %v1448_v39 }
  0x7f   : > { %692 = vmatprep.subr.bf16.mxu0 %v1452_v40 }
  0x80   : > { %734 = vmatpush1.bf16.msra.mxu1 %v1487_v49 }
  0x81   : > { %735 = vmatprep.subr.bf16.mxu1 %v1488_v50 }
  0x82   : > { %693 = vmatpush1.bf16.msra.mxu0 %v1454_v43 }
  0x83   : > { %694 = vmatprep.subr.bf16.mxu0 %v1458_v44 }
  0x84   : > { %736 = vmatpush1.bf16.msra.mxu1 %v1490_v53 }
  0x85   : > { %737 = vmatprep.subr.bf16.mxu1 %v1491_v55 }
  0x86   : > { %695 = vmatpush1.bf16.msra.mxu0 %v1460_v47 }
  0x87   : > { %696 = vmatprep.subr.bf16.mxu0 %v1464_v48 }
  0x88   : > { %738 = vmatpush1.bf16.msra.mxu1 %v1493_v57 }
  0x89   : > { %739 = vmatprep.subr.bf16.mxu1 %v1494_v58 }
  0x8a   : > { %697 = vmatpush1.bf16.msra.mxu0 %v1466_v51 }
  0x8b   : > { %698 = vmatprep.subr.bf16.mxu0 %v1470_v52 }
  0x8c   : > { %740 = vmatpush1.bf16.msra.mxu1 %v1496_v61 }
  0x8d   : > { %741 = vmatprep.subr.bf16.mxu1 %v1497_v63 }
  0x8e   : > { %699 = vmatpush1.bf16.msra.mxu0 %v1472_v54 }
  0x8f   : > { %700 = vmatprep.subr.bf16.mxu0 %v1476_v56 }
  0x90   : > { %742 = vmatpush1.bf16.msra.mxu1 %v1499_v2 }
  0x91   : > { %743 = vmatprep.subr.bf16.mxu1 %v1500_v3 }
  0x92   : > { %701 = vmatpush1.bf16.msra.mxu0 %v1478_v59 }
  0x93   : > { %982 = vmatprep.subr.bf16.mxu0 %v1505_v60 }
  0x94   : > { %744 = vmatpush1.bf16.msra.mxu1 %v1502_v6 }
  0x95   : > { %703 = vmatmul.mubr.bf16.vlgmr.msra.gmra.mrb[0].mxu0 %v1482_v62 }
  0x96   : > { %983 = vmatpush1.bf16.msra.mxu0 %v1503_v0 }
  0x97   : > { %984 = vmatprep.subr.bf16.mxu0 %v1508_v1  ;;  %746 = vmatmul.mubr.bf16.vlgmr.msra.gmra.mrb[0].mxu1 %v1482_v62 }
  0x9a   : > { %985 = vmatpush1.bf16.msra.mxu0 %v1506_v4 }
  0x9b   : > { %986 = vmatprep.subr.bf16.mxu0 %v1511_v5 }
  0x9e   : > { %987 = vmatpush1.bf16.msra.mxu0 %v1509_v7 }
  0x9f   : > { %988 = vmatprep.subr.bf16.mxu0 %v1514_v8 }
  0xa2   : > { %989 = vmatpush1.bf16.msra.mxu0 %v1512_v9 }
  0xa3   : > { %990 = vmatprep.subr.bf16.mxu0 %v1517_v10 }
  0xa6   : > { %991 = vmatpush1.bf16.msra.mxu0 %v1515_v11 }
  0xa7   : > { %992 = vmatprep.subr.bf16.mxu0 %v1520_v12 }
  0xaa   : > { %993 = vmatpush1.bf16.msra.mxu0 %v1518_v13 }
  0xab   : > { %994 = vmatprep.subr.bf16.mxu0 %v1523_v14 }
  0xae   : > { %995 = vmatpush1.bf16.msra.mxu0 %v1521_v15 }
  0xaf   : > { %996 = vmatprep.subr.bf16.mxu0 %v1526_v16 }
  0xb2   : > { %997 = vmatpush1.bf16.msra.mxu0 %v1524_v17 }
  0xb3   : > { %998 = vmatprep.subr.bf16.mxu0 %v1529_v18 }
  0xb6   : > { %999 = vmatpush1.bf16.msra.mxu0 %v1527_v19 }
  0xb7   : > { %1000 = vmatprep.subr.bf16.mxu0 %v1532_v20 }
  0xba   : > { %1001 = vmatpush1.bf16.msra.mxu0 %v1530_v21 }
  0xbb   : > { %1002 = vmatprep.subr.bf16.mxu0 %v1535_v22 }
  0xbe   : > { %1003 = vmatpush1.bf16.msra.mxu0 %v1533_v23 }
  0xbf   : > { %1004 = vmatprep.subr.bf16.mxu0 %v1538_v24 }
  0xc2   : > { %1005 = vmatpush1.bf16.msra.mxu0 %v1536_v25 }
  0xc3   : > { %1006 = vmatprep.subr.bf16.mxu0 %v1541_v26 }
  0xc6   : > { %1007 = vmatpush1.bf16.msra.mxu0 %v1539_v27 }
  0xc7   : > { %1008 = vmatprep.subr.bf16.mxu0 %v1544_v28 }
  0xca   : > { %1009 = vmatpush1.bf16.msra.mxu0 %v1542_v29 }
  0xcb   : > { %1010 = vmatprep.subr.bf16.mxu0 %v1547_v30 }
  0xce   : > { %1011 = vmatpush1.bf16.msra.mxu0 %v1545_v31 }
  0xcf   : > { %1012 = vmatprep.subr.bf16.mxu0 %v1550_v32 }
  0xd2   : > { %1013 = vmatpush1.bf16.msra.mxu0 %v1548_v33 }
 0x168   : > { %v704_v34 = vpop.f32.mrb[0].mxu0 }
 0x169   : > { %v1273_v35 = vmul.f32 -1.442695, %v704_v34  ;;  %v706_v36 = vpop.f32.mrb[1].mxu0 }
 0x16a   : > { %v1274_v37 = vmul.f32 -1.442695, %v706_v36  ;;  %v708_v38 = vpop.f32.mrb[2].mxu0  ;;  %v747_v42 = vpop.f32.mrb[0].mxu1 }
 0x16b   : > { %1551 = vpow2.f32 %v1273_v35  ;;  %v1275_v39 = vmul.f32 -1.442695, %v708_v38  ;;  %v710_v40 = vpop.f32.mrb[3].mxu0  ;;  %v749_v43 = vpop.f32.mrb[1].mxu1 }
 0x16c   : > { %1553 = vpow2.f32 %v1274_v37  ;;  %v1276_v41 = vmul.f32 -1.442695, %v710_v40  ;;  %v751_v44 = vpop.f32.mrb[2].mxu1 }
 0x16d   : > { %1555 = vpow2.f32 %v1275_v39  ;;  %v753_v46 = vpop.f32.mrb[3].mxu1 }
 0x16e   : > { %1557 = vpow2.f32 %v1276_v41 }
 0x175   : > { %v1552_v45 = vpop.eup %1551 }
 0x176   : > { %v1554_v47 = vpop.eup %1553  ;;  %v768_v48 = vadd.f32 1.0, %v1552_v45 }
 0x177   : > { %v1556_v49 = vpop.eup %1555  ;;  %v769_v50 = vadd.f32 1.0, %v1554_v47 }
 0x178   : > { %v1558_v51 = vpop.eup %1557  ;;  %1559 = vrcp.f32 %v768_v48  ;;  %v770_v52 = vadd.f32 1.0, %v1556_v49 }
 0x179   : > { %1561 = vrcp.f32 %v769_v50  ;;  %v771_v53 = vadd.f32 1.0, %v1558_v51 }
 0x17a   : > { %1563 = vrcp.f32 %v770_v52 }
 0x17b   : > { %1565 = vrcp.f32 %v771_v53 }
 0x182   : > { %v1560_v54 = vpop.eup %1559 }
 0x183   : > { %v1562_v55 = vpop.eup %1561  ;;  %v780_v56 = vmul.f32 %v1560_v54, %v704_v34 }
 0x184   : > { %v1564_v57 = vpop.eup %1563  ;;  %v781_v58 = vmul.f32 %v1562_v55, %v706_v36 }
 0x185   : > { %v1566_v59 = vpop.eup %1565  ;;  %v782_v60 = vmul.f32 %v1564_v57, %v708_v38  ;;  %v784_v61 = vmul.f32 %v780_v56, %v747_v42 }
 0x186   : > { %v783_v62 = vmul.f32 %v1566_v59, %v710_v40  ;;  %v785_v63 = vmul.f32 %v781_v58, %v749_v43 }
 0x187   : > { %v786_v0 = vmul.f32 %v782_v60, %v751_v44 }
 0x188   : > { %v787_v1 = vmul.f32 %v783_v62, %v753_v46 }
 0x189   : > { %v788_v2 = vpack.c.bf16 %v786_v0, %v784_v61 }
 0x18a   : > { %v789_v3 = vpack.c.bf16 %v787_v1, %v785_v63 }
 0x18c   : > { %1014 = vmatprep.mubr.bf16.mxu0 %v789_v3 }
 0x18d   : > { %1015 = vmatmul.mubr.bf16.vlgmr.msra.gmra.mrb[4].mxu0 %v788_v2 }
 0x25d   : > { %1028 = sbr.rel (%p1309_p13) target bundleno = 613 (0x265), region = 44 }
 0x260   : > { %v1016_v4 = vpop.f32.mrb[4].mxu0 }
 0x261   : > { %v1018_v5 = vpop.f32.mrb[5].mxu0  ;;  %1029 = vst [vmem:[#allocation2] sm:$0xff] (!%p1309_p13), %v1016_v4 }
 0x262   : > { %v1020_v6 = vpop.f32.mrb[6].mxu0  ;;  %1030 = vst [vmem:[#allocation2 + $0x8] sm:$0xff] (!%p1309_p13), %v1018_v5 }
 0x263   : > { %v1022_v7 = vpop.f32.mrb[7].mxu0  ;;  %1031 = vst [vmem:[#allocation2 + $0x10] sm:$0xff] (!%p1309_p13), %v1020_v6 }
 0x264   : > { %1032 = vst [vmem:[#allocation2 + $0x18] sm:$0xff] %v1022_v7 }
 0x265 PF: > { %p1310_p5 = scmp.le.s32.totalorder %s1681_s15, 0 }
 0x267   : > { %1036 = sbr.rel (%p1310_p5) target bundleno = 623 (0x26f), region = 48 }
 0x269   : > { %v1037_v8 = vld [vmem:[#allocation2] sm:$0xff] (!%p1310_p5) }
 0x26a   : > { %v1038_v9 = vld [vmem:[#allocation2 + $0x8] sm:$0xff] (!%p1310_p5)  ;;  %v1041_v11 = vadd.f32 (!%p1310_p5), %v1037_v8, %v1016_v4 }
 0x26b   : > { %v1039_v10 = vld [vmem:[#allocation2 + $0x10] sm:$0xff] (!%p1310_p5)  ;;  %v1042_v12 = vadd.f32 (!%p1310_p5), %v1038_v9, %v1018_v5  ;;  %v1040_v14 = vld [vmem:[#allocation2 + $0x18] sm:$0xff] (!%p1310_p5) }
 0x26c   : > { %v1043_v13 = vadd.f32 (!%p1310_p5), %v1039_v10, %v1020_v6  ;;  %v1044_v15 = vadd.f32 (!%p1310_p5), %v1040_v14, %v1022_v7  ;;  %1045 = vst [vmem:[#allocation2] sm:$0xff] (!%p1310_p5), %v1041_v11 }
 0x26d   : > { %1046 = vst [vmem:[#allocation2 + $0x8] sm:$0xff] (!%p1310_p5), %v1042_v12 }
 0x26e   : > { %1047 = vst [vmem:[#allocation2 + $0x10] sm:$0xff] %v1043_v13  ;;  %1048 = vst [vmem:[#allocation2 + $0x18] sm:$0xff] %v1044_v15 }
 0x26f PF: > { %p1311_p8 = scmp.ne.s32.totalorder %s1681_s15, 1 }
 0x271   : > { %1052 = sbr.rel (%p1311_p8) target bundleno = 633 (0x279), region = 52 }
 0x274   : > { %v1053_v16 = vld [vmem:[#allocation2] sm:$0xff] (!%p1311_p8) }
 0x275   : > { %v1054_v17 = vld [vmem:[#allocation2 + $0x8] sm:$0xff] (!%p1311_p8)  ;;  %v1055_v18 = vld [vmem:[#allocation2 + $0x10] sm:$0xff] (!%p1311_p8)  ;;  %v1056_v20 = vld [vmem:[#allocation2 + $0x18] sm:$0xff] (!%p1311_p8) }
 0x276   : > { %v1321_v19 = vpack.c.bf16 (!%p1311_p8), %v1054_v17, %v1053_v16  ;;  %v1322_v21 = vpack.c.bf16 (!%p1311_p8), %v1056_v20, %v1055_v18 }
 0x278   : > { %1069 = vst [vmem:[%s1904_s6] sm:$0xff] %v1321_v19  ;;  %1070 = vst [vmem:[%s1904_s6 + $0x8] sm:$0xff] %v1322_v21 }
 0x279 PF: > { %s19_s19 = sadd.s32 1, %s1697_s19   ;;  %s2051_s12 = smov %s1673_s13 }
 0x27a   : > { %p16_p3 = scmp.ge.s32.totalorder %s19_s19, 6   ;;  %s2052_s13 = smov %s1677_s14 }
 0x27b   : > { %s2053_s14 = smov %s1784_s26  ;;  %s2054_s15 = smov %s1689_s17 }
 0x27c   : > { %s2055_s16 = smov %s1693_s18  ;;  %s2056_s17 = smov %s2059_s21 }
 0x27d   : > { %s2057_s18 = smov %s2063_s22  ;;  %18 = sbr.rel (!%p16_p3) target bundleno = 7 (0x7), region = 100 }
 0x284   :  { %1095 = vsyncpa [#allocation4], 1 }
 0x285   :  { %1097 = vsyncpa [#allocation4 + $0x1], 1 }
 0x286   :  { %1098 = vsyncpa [#allocation6], 1 }
 0x287   :  { %1100 = vsyncpa [#allocation6 + $0x1], 1 }

</bundles_post_ra>
